<compile_context>
chip_gen: v7x
topology: tpu7x:2x2x1
jax: 0.10.0
libtpu: 0.0.40
codegen_flags: <defaults>
</compile_context>

<pallas_src>
import jax
import jax.numpy as jnp
from jax.experimental import pallas as pl
from jax.experimental.pallas import tpu as pltpu

INPUT_SIZE = 5            # module default
HIDDEN = 32               # module default
NUM_LAYERS = 3            # module default
IN_DIM = INPUT_SIZE + 1   # emb_t concat h_t_1_tilde


def _lstm_decoder_kernel(x_ref, h0_ref, c0_ref, w_ref, b_ref,
                         y_ref, hn_ref, cn_ref):
    """One grid step = one LSTM time step over all NUM_LAYERS layers.

    x_ref : (1, B, H)   zero-padded step input
    h0/c0 : (L, B, H)   initial state (resident, fetched once)
    w_ref : (L, 2H, 4H) fused [W_ih^T ; W_hh^T] (resident)
    b_ref : (L, 1, 4H)  b_ih + b_hh (resident)
    y_ref : (1, B, H)   per-step top-layer output
    hn/cn : (L, B, H)   output-resident state carry (written back once at end)
    """
    H = HIDDEN
    t = pl.program_id(0)

    @pl.when(t == 0)
    def _():
        hn_ref[...] = h0_ref[...]
        cn_ref[...] = c0_ref[...]

    inp = x_ref[0]                                     # (B, H)
    for l in range(NUM_LAYERS):                        # static unroll (tiny L)
        h_prev = hn_ref[l]                             # (B, H)
        c_prev = cn_ref[l]                             # (B, H)
        # Fused gates: [inp | h_prev] (B, 2H) @ W_cat (2H, 4H) -> (B, 4H)
        xh = jnp.concatenate([inp, h_prev], axis=-1).astype(w_ref.dtype)
        gates = (jnp.dot(xh, w_ref[l], preferred_element_type=jnp.float32)
                 + b_ref[l])                           # (B, 4H), f32
        # Two full-vreg EUP ops instead of four masked 32-lane ones.
        sig = jax.nn.sigmoid(gates)
        tng = jnp.tanh(gates)
        i_g = sig[:, 0 * H:1 * H]
        f_g = sig[:, 1 * H:2 * H]
        g_g = tng[:, 2 * H:3 * H]
        o_g = sig[:, 3 * H:4 * H]
        c_new = f_g * c_prev + i_g * g_g
        h_new = o_g * jnp.tanh(c_new)
        hn_ref[l] = h_new                              # state carry for next step
        cn_ref[l] = c_new
        inp = h_new                                    # feed next layer
    y_ref[0] = inp                                     # top-layer hidden at step t


def _run_kernel(x_tbh, h0, c0, w_cat, b):
    T, B, _ = x_tbh.shape
    resident = lambda t: (0, 0, 0)                     # fetched once, stays in VMEM
    return pl.pallas_call(
        _lstm_decoder_kernel,
        out_shape=(
            jax.ShapeDtypeStruct((T, B, HIDDEN), jnp.float32),          # y (T,B,H)
            jax.ShapeDtypeStruct((NUM_LAYERS, B, HIDDEN), jnp.float32),  # h_n
            jax.ShapeDtypeStruct((NUM_LAYERS, B, HIDDEN), jnp.float32),  # c_n
        ),
        grid_spec=pltpu.PrefetchScalarGridSpec(
            num_scalar_prefetch=0,
            grid=(T,),
            in_specs=[
                pl.BlockSpec((1, B, HIDDEN), lambda t: (t, 0, 0)),                  # x
                pl.BlockSpec((NUM_LAYERS, B, HIDDEN), resident),                    # h0
                pl.BlockSpec((NUM_LAYERS, B, HIDDEN), resident),                    # c0
                pl.BlockSpec((NUM_LAYERS, 2 * HIDDEN, 4 * HIDDEN), resident),       # W_cat
                pl.BlockSpec((NUM_LAYERS, 1, 4 * HIDDEN), resident),                # bias
            ],
            out_specs=(
                pl.BlockSpec((1, B, HIDDEN), lambda t: (t, 0, 0)),                  # y
                pl.BlockSpec((NUM_LAYERS, B, HIDDEN), resident),                    # h_n
                pl.BlockSpec((NUM_LAYERS, B, HIDDEN), resident),                    # c_n
            ),
        ),
        compiler_params=pltpu.CompilerParams(
            dimension_semantics=("arbitrary",)),       # sequential carry over time
    )(x_tbh, h0, c0, w_cat, b)


def init_decoder_params(key):
    """Deterministic params with PyTorch-LSTM shapes: per layer
       W_ih:(4H,in), W_hh:(4H,H), b_ih:(4H,), b_hh:(4H,)."""
    bound = 1.0 / jnp.sqrt(jnp.float32(HIDDEN))
    params = []
    for l in range(NUM_LAYERS):
        in_dim = IN_DIM if l == 0 else HIDDEN
        key, k1, k2, k3, k4 = jax.random.split(key, 5)
        params.append(dict(
            w_ih=jax.random.uniform(k1, (4 * HIDDEN, in_dim), jnp.float32, -bound, bound),
            w_hh=jax.random.uniform(k2, (4 * HIDDEN, HIDDEN), jnp.float32, -bound, bound),
            b_ih=jax.random.uniform(k3, (4 * HIDDEN,), jnp.float32, -bound, bound),
            b_hh=jax.random.uniform(k4, (4 * HIDDEN,), jnp.float32, -bound, bound),
        ))
    return params


def pack_decoder_params(params, weight_dtype=jnp.float32):
    """Pack once (hoisted out of the decode loop): fused W_cat (L, 2H, 4H) and
       combined bias (L, 1, 4H).  weight_dtype=jnp.bfloat16 halves weight DMA
       (loosen the allclose tolerance if used)."""
    w_cat, bias = [], []
    for p in params:
        wt = p["w_ih"].T                                   # (in_dim, 4H)
        if wt.shape[0] < HIDDEN:                           # zero-pad layer-0 rows to H
            wt = jnp.pad(wt, ((0, HIDDEN - wt.shape[0]), (0, 0)))
        w_cat.append(jnp.concatenate([wt, p["w_hh"].T], axis=0))   # (2H, 4H)
        bias.append((p["b_ih"] + p["b_hh"])[None, :])              # (1, 4H)
    return (jnp.stack(w_cat).astype(weight_dtype),
            jnp.stack(bias).astype(jnp.float32))


@jax.jit
def decoder_forward(packed_params, emb_t, h_t_1_tilde, h_t_1):
    """Mirrors Decoder.forward (eval mode): returns (y, (h_n, c_n)).
       emb_t:(B,T,input_size), h_t_1_tilde:(B,T,1) or None, h_t_1=(h0,c0):(L,B,H)."""
    w_cat, b = packed_params
    B, T, _ = emb_t.shape
    if h_t_1_tilde is None:
        h_t_1_tilde = jnp.zeros((B, T, 1), emb_t.dtype)
    x = jnp.concatenate([emb_t, h_t_1_tilde], axis=-1)             # (B, T, IN_DIM)
    x = jnp.pad(x, ((0, 0), (0, 0), (0, HIDDEN - IN_DIM)))         # (B, T, H); pad cols
    x_tbh = jnp.transpose(x, (1, 0, 2)).astype(jnp.float32)        #   hit zero W rows
    h0, c0 = h_t_1
    y_tbh, hn, cn = _run_kernel(x_tbh,
                                h0.astype(jnp.float32), c0.astype(jnp.float32),
                                w_cat, b)
    y = jnp.transpose(y_tbh, (1, 0, 2))                            # (B, T, H) batch_first
    return y, (hn, cn)


def _reference_forward(params, emb_t, h_t_1_tilde, h_t_1):
    """Pure-JAX reference (PyTorch stacked-LSTM semantics, eval mode)."""
    B, T, _ = emb_t.shape
    if h_t_1_tilde is None:
        h_t_1_tilde = jnp.zeros((B, T, 1), emb_t.dtype)
    x = jnp.concatenate([emb_t, h_t_1_tilde], axis=-1)             # (B, T, IN_DIM)
    h = [h_t_1[0][l] for l in range(NUM_LAYERS)]
    c = [h_t_1[1][l] for l in range(NUM_LAYERS)]
    ys = []
    for t in range(T):
        inp = x[:, t, :]
        for l, p in enumerate(params):
            gates = inp @ p["w_ih"].T + h[l] @ p["w_hh"].T + p["b_ih"] + p["b_hh"]
            i, f, g, o = jnp.split(gates, 4, axis=-1)
            c[l] = jax.nn.sigmoid(f) * c[l] + jax.nn.sigmoid(i) * jnp.tanh(g)
            h[l] = jax.nn.sigmoid(o) * jnp.tanh(c[l])
            inp = h[l]
        ys.append(inp)
    return jnp.stack(ys, axis=1), (jnp.stack(h), jnp.stack(c))


if __name__ == "__main__":
    key = jax.random.PRNGKey(0)
    k_par, k_emb, k_til, k_h, k_c, k_emb2, k_til2 = jax.random.split(key, 7)

    B = 2
    params = init_decoder_params(k_par)
    packed = pack_decoder_params(params)          # packed ONCE, outside the decode loop

    h0 = jax.random.normal(k_h, (NUM_LAYERS, B, HIDDEN), jnp.float32)
    c0 = jax.random.normal(k_c, (NUM_LAYERS, B, HIDDEN), jnp.float32)

    # --- single decode step (DeepAR usage: T == 1) -------------------------------
    emb_t = jax.random.normal(k_emb, (B, 1, INPUT_SIZE), jnp.float32)
    h_t_1_tilde = jax.random.normal(k_til, (B, 1, 1), jnp.float32)

    y, (hn, cn) = decoder_forward(packed, emb_t, h_t_1_tilde, (h0, c0))
    jax.block_until_ready((y, hn, cn))
    y_ref, (hn_ref, cn_ref) = _reference_forward(params, emb_t, h_t_1_tilde, (h0, c0))
    assert y.shape == (B, 1, HIDDEN) and hn.shape == (NUM_LAYERS, B, HIDDEN)
    assert jnp.allclose(y, y_ref, atol=1e-5)
    assert jnp.allclose(hn, hn_ref, atol=1e-5)
    assert jnp.allclose(cn, cn_ref, atol=1e-5)

    # --- h_t_1_tilde = None branch ------------------------------------------------
    y0, (hn0, cn0) = decoder_forward(packed, emb_t, None, (h0, c0))
    y0_ref, (hn0_ref, cn0_ref) = _reference_forward(params, emb_t, None, (h0, c0))
    jax.block_until_ready((y0, hn0, cn0))
    assert jnp.allclose(y0, y0_ref, atol=1e-5)
    assert jnp.allclose(hn0, hn0_ref, atol=1e-5)
    assert jnp.allclose(cn0, cn0_ref, atol=1e-5)

    # --- multi-step sequence: time loop runs inside the kernel (grid=(T,)) --------
    T = 4
    emb_seq = jax.random.normal(k_emb2, (B, T, INPUT_SIZE), jnp.float32)
    til_seq = jax.random.normal(k_til2, (B, T, 1), jnp.float32)
    y2, (hn2, cn2) = decoder_forward(packed, emb_seq, til_seq, (h0, c0))
    jax.block_until_ready((y2, hn2, cn2))
    y2_ref, (hn2_ref, cn2_ref) = _reference_forward(params, emb_seq, til_seq, (h0, c0))
    assert y2.shape == (B, T, HIDDEN)
    assert jnp.allclose(y2, y2_ref, atol=1e-5)
    assert jnp.allclose(hn2, hn2_ref, atol=1e-5)
    assert jnp.allclose(cn2, cn2_ref, atol=1e-5)

    print("KERNEL_OK")
</pallas_src>

<mosaic_0001>
module attributes {stable_mosaic.version = 11 : i64} {
  func.func @_lstm_decoder_kernel(%arg0: i32, %arg1: memref<1x2x32xf32, #tpu.memory_space<vmem>>, %arg2: memref<3x2x32xf32, #tpu.memory_space<vmem>>, %arg3: memref<3x2x32xf32, #tpu.memory_space<vmem>>, %arg4: memref<3x64x128xf32, #tpu.memory_space<vmem>>, %arg5: memref<3x1x128xf32, #tpu.memory_space<vmem>>, %arg6: memref<1x2x32xf32, #tpu.memory_space<vmem>>, %arg7: memref<3x2x32xf32, #tpu.memory_space<vmem>>, %arg8: memref<3x2x32xf32, #tpu.memory_space<vmem>>) attributes {dimension_semantics = [#tpu.dimension_semantics<arbitrary>], iteration_bounds = array<i64: 1>, scalar_prefetch = 0 : i64, scratch_operands = 0 : i64, tpu.core_type = #tpu.core_type<tc>, window_params = [{transform_indices = @transform_0, window_bounds = array<i64: 1, 2, 32>}, {pipeline_mode = #tpu.pipeline_mode<synchronous>, transform_indices = @transform_1, window_bounds = array<i64: 3, 2, 32>}, {pipeline_mode = #tpu.pipeline_mode<synchronous>, transform_indices = @transform_2, window_bounds = array<i64: 3, 2, 32>}, {pipeline_mode = #tpu.pipeline_mode<synchronous>, transform_indices = @transform_3, window_bounds = array<i64: 3, 64, 128>}, {pipeline_mode = #tpu.pipeline_mode<synchronous>, transform_indices = @transform_4, window_bounds = array<i64: 3, 1, 128>}, {transform_indices = @transform_5, window_bounds = array<i64: 1, 2, 32>}, {pipeline_mode = #tpu.pipeline_mode<synchronous>, transform_indices = @transform_6, window_bounds = array<i64: 3, 2, 32>}, {pipeline_mode = #tpu.pipeline_mode<synchronous>, transform_indices = @transform_7, window_bounds = array<i64: 3, 2, 32>}]} {
    %c0_i32 = arith.constant 0 : i32
    %0 = arith.cmpi eq, %arg0, %c0_i32 : i32
    %1 = arith.extui %0 : i1 to i32
    %c0_i32_0 = arith.constant 0 : i32
    %2 = arith.cmpi ne, %1, %c0_i32_0 : i32
    scf.if %2 {
      %c0_63 = arith.constant 0 : index
      %c0_64 = arith.constant 0 : index
      %c0_65 = arith.constant 0 : index
      %107 = vector.load %arg2[%c0_63, %c0_64, %c0_65] : memref<3x2x32xf32, #tpu.memory_space<vmem>>, vector<3x2x32xf32>
      %c0_66 = arith.constant 0 : index
      %c0_67 = arith.constant 0 : index
      %c0_68 = arith.constant 0 : index
      %108 = vector.load %arg7[%c0_66, %c0_67, %c0_68] : memref<3x2x32xf32, #tpu.memory_space<vmem>>, vector<3x2x32xf32>
      tpu.vector_store %arg7[%c0_66, %c0_67, %c0_68], %107 {strides = array<i32>} : memref<3x2x32xf32, #tpu.memory_space<vmem>>, vector<3x2x32xf32>,
      %c0_69 = arith.constant 0 : index
      %c0_70 = arith.constant 0 : index
      %c0_71 = arith.constant 0 : index
      %109 = vector.load %arg3[%c0_69, %c0_70, %c0_71] : memref<3x2x32xf32, #tpu.memory_space<vmem>>, vector<3x2x32xf32>
      %c0_72 = arith.constant 0 : index
      %c0_73 = arith.constant 0 : index
      %c0_74 = arith.constant 0 : index
      %110 = vector.load %arg8[%c0_72, %c0_73, %c0_74] : memref<3x2x32xf32, #tpu.memory_space<vmem>>, vector<3x2x32xf32>
      tpu.vector_store %arg8[%c0_72, %c0_73, %c0_74], %109 {strides = array<i32>} : memref<3x2x32xf32, #tpu.memory_space<vmem>>, vector<3x2x32xf32>,
    } else {
    }
    %c0 = arith.constant 0 : index
    %c0_1 = arith.constant 0 : index
    %c0_2 = arith.constant 0 : index
    %3 = vector.load %arg1[%c0, %c0_1, %c0_2] : memref<1x2x32xf32, #tpu.memory_space<vmem>>, vector<1x2x32xf32>
    %4 = vector.shape_cast %3 : vector<1x2x32xf32> to vector<2x32xf32>
    %c0_3 = arith.constant 0 : index
    %c0_4 = arith.constant 0 : index
    %c0_5 = arith.constant 0 : index
    %5 = vector.load %arg7[%c0_3, %c0_4, %c0_5] : memref<3x2x32xf32, #tpu.memory_space<vmem>>, vector<1x2x32xf32>
    %6 = vector.shape_cast %5 : vector<1x2x32xf32> to vector<2x32xf32>
    %c0_6 = arith.constant 0 : index
    %c0_7 = arith.constant 0 : index
    %c0_8 = arith.constant 0 : index
    %7 = vector.load %arg8[%c0_6, %c0_7, %c0_8] : memref<3x2x32xf32, #tpu.memory_space<vmem>>, vector<1x2x32xf32>
    %8 = vector.shape_cast %7 : vector<1x2x32xf32> to vector<2x32xf32>
    %9 = tpu.concatenate %4, %6 in 1 : vector<2x32xf32>, vector<2x32xf32> -> vector<2x64xf32>
    %c0_9 = arith.constant 0 : index
    %c0_10 = arith.constant 0 : index
    %c0_11 = arith.constant 0 : index
    %10 = vector.load %arg4[%c0_9, %c0_10, %c0_11] : memref<3x64x128xf32, #tpu.memory_space<vmem>>, vector<1x64x128xf32>
    %11 = vector.shape_cast %10 : vector<1x64x128xf32> to vector<64x128xf32>
    %cst = arith.constant dense<0.000000e+00> : vector<2x128xf32>
    %12 = tpu.matmul %9, %11, %cst {dimension_numbers = #tpu.dot_dimension_numbers<[1], [0], [0], [1], [0, 0, 1, 1], [], []>} : vector<2x64xf32>, vector<64x128xf32>, vector<2x128xf32> -> vector<2x128xf32>
    %c0_12 = arith.constant 0 : index
    %c0_13 = arith.constant 0 : index
    %c0_14 = arith.constant 0 : index
    %13 = vector.load %arg5[%c0_12, %c0_13, %c0_14] : memref<3x1x128xf32, #tpu.memory_space<vmem>>, vector<1x1x128xf32>
    %14 = vector.shape_cast %13 : vector<1x1x128xf32> to vector<1x128xf32>
    %15 = vector.broadcast %14 : vector<1x128xf32> to vector<2x128xf32>
    %16 = arith.addf %12, %15 : vector<2x128xf32>
    %17 = arith.negf %16 : vector<2x128xf32>
    %18 = math.exp %17 : vector<2x128xf32>
    %cst_15 = arith.constant 1.000000e+00 : f32
    %19 = vector.broadcast %cst_15 : f32 to vector<2x128xf32>
    %20 = arith.addf %19, %18 : vector<2x128xf32>
    %21 = arith.divf %19, %20 : vector<2x128xf32>
    %22 = math.tanh %16 : vector<2x128xf32>
    %23 = vector.extract_strided_slice %21 {offsets = [0, 0], sizes = [2, 32], strides = [1, 1]} : vector<2x128xf32> to vector<2x32xf32>
    %24 = vector.extract_strided_slice %21 {offsets = [0, 32], sizes = [2, 32], strides = [1, 1]} : vector<2x128xf32> to vector<2x32xf32>
    %25 = vector.extract_strided_slice %22 {offsets = [0, 64], sizes = [2, 32], strides = [1, 1]} : vector<2x128xf32> to vector<2x32xf32>
    %26 = vector.extract_strided_slice %21 {offsets = [0, 96], sizes = [2, 32], strides = [1, 1]} : vector<2x128xf32> to vector<2x32xf32>
    %27 = arith.mulf %24, %8 : vector<2x32xf32>
    %28 = arith.mulf %23, %25 : vector<2x32xf32>
    %29 = arith.addf %27, %28 : vector<2x32xf32>
    %30 = math.tanh %29 : vector<2x32xf32>
    %31 = arith.mulf %26, %30 : vector<2x32xf32>
    %c0_16 = arith.constant 0 : index
    %c0_17 = arith.constant 0 : index
    %c0_18 = arith.constant 0 : index
    %32 = vector.load %arg7[%c0_16, %c0_17, %c0_18] : memref<3x2x32xf32, #tpu.memory_space<vmem>>, vector<1x2x32xf32>
    %33 = vector.shape_cast %32 : vector<1x2x32xf32> to vector<2x32xf32>
    %34 = vector.shape_cast %31 : vector<2x32xf32> to vector<1x2x32xf32>
    tpu.vector_store %arg7[%c0_16, %c0_17, %c0_18], %34 {strides = array<i32>} : memref<3x2x32xf32, #tpu.memory_space<vmem>>, vector<1x2x32xf32>,
    %c0_19 = arith.constant 0 : index
    %c0_20 = arith.constant 0 : index
    %c0_21 = arith.constant 0 : index
    %35 = vector.load %arg8[%c0_19, %c0_20, %c0_21] : memref<3x2x32xf32, #tpu.memory_space<vmem>>, vector<1x2x32xf32>
    %36 = vector.shape_cast %35 : vector<1x2x32xf32> to vector<2x32xf32>
    %37 = vector.shape_cast %29 : vector<2x32xf32> to vector<1x2x32xf32>
    tpu.vector_store %arg8[%c0_19, %c0_20, %c0_21], %37 {strides = array<i32>} : memref<3x2x32xf32, #tpu.memory_space<vmem>>, vector<1x2x32xf32>,
    %c1 = arith.constant 1 : index
    %c0_22 = arith.constant 0 : index
    %c0_23 = arith.constant 0 : index
    %38 = vector.load %arg7[%c1, %c0_22, %c0_23] : memref<3x2x32xf32, #tpu.memory_space<vmem>>, vector<1x2x32xf32>
    %39 = vector.shape_cast %38 : vector<1x2x32xf32> to vector<2x32xf32>
    %c1_24 = arith.constant 1 : index
    %c0_25 = arith.constant 0 : index
    %c0_26 = arith.constant 0 : index
    %40 = vector.load %arg8[%c1_24, %c0_25, %c0_26] : memref<3x2x32xf32, #tpu.memory_space<vmem>>, vector<1x2x32xf32>
    %41 = vector.shape_cast %40 : vector<1x2x32xf32> to vector<2x32xf32>
    %42 = tpu.concatenate %31, %39 in 1 : vector<2x32xf32>, vector<2x32xf32> -> vector<2x64xf32>
    %c1_27 = arith.constant 1 : index
    %c0_28 = arith.constant 0 : index
    %c0_29 = arith.constant 0 : index
    %43 = vector.load %arg4[%c1_27, %c0_28, %c0_29] : memref<3x64x128xf32, #tpu.memory_space<vmem>>, vector<1x64x128xf32>
    %44 = vector.shape_cast %43 : vector<1x64x128xf32> to vector<64x128xf32>
    %cst_30 = arith.constant dense<0.000000e+00> : vector<2x128xf32>
    %45 = tpu.matmul %42, %44, %cst_30 {dimension_numbers = #tpu.dot_dimension_numbers<[1], [0], [0], [1], [0, 0, 1, 1], [], []>} : vector<2x64xf32>, vector<64x128xf32>, vector<2x128xf32> -> vector<2x128xf32>
    %c1_31 = arith.constant 1 : index
    %c0_32 = arith.constant 0 : index
    %c0_33 = arith.constant 0 : index
    %46 = vector.load %arg5[%c1_31, %c0_32, %c0_33] : memref<3x1x128xf32, #tpu.memory_space<vmem>>, vector<1x1x128xf32>
    %47 = vector.shape_cast %46 : vector<1x1x128xf32> to vector<1x128xf32>
    %48 = vector.broadcast %47 : vector<1x128xf32> to vector<2x128xf32>
    %49 = arith.addf %45, %48 : vector<2x128xf32>
    %50 = arith.negf %49 : vector<2x128xf32>
    %51 = math.exp %50 : vector<2x128xf32>
    %cst_34 = arith.constant 1.000000e+00 : f32
    %52 = vector.broadcast %cst_34 : f32 to vector<2x128xf32>
    %53 = arith.addf %52, %51 : vector<2x128xf32>
    %54 = arith.divf %52, %53 : vector<2x128xf32>
    %55 = math.tanh %49 : vector<2x128xf32>
    %56 = vector.extract_strided_slice %54 {offsets = [0, 0], sizes = [2, 32], strides = [1, 1]} : vector<2x128xf32> to vector<2x32xf32>
    %57 = vector.extract_strided_slice %54 {offsets = [0, 32], sizes = [2, 32], strides = [1, 1]} : vector<2x128xf32> to vector<2x32xf32>
    %58 = vector.extract_strided_slice %55 {offsets = [0, 64], sizes = [2, 32], strides = [1, 1]} : vector<2x128xf32> to vector<2x32xf32>
    %59 = vector.extract_strided_slice %54 {offsets = [0, 96], sizes = [2, 32], strides = [1, 1]} : vector<2x128xf32> to vector<2x32xf32>
    %60 = arith.mulf %57, %41 : vector<2x32xf32>
    %61 = arith.mulf %56, %58 : vector<2x32xf32>
    %62 = arith.addf %60, %61 : vector<2x32xf32>
    %63 = math.tanh %62 : vector<2x32xf32>
    %64 = arith.mulf %59, %63 : vector<2x32xf32>
    %c1_35 = arith.constant 1 : index
    %c0_36 = arith.constant 0 : index
    %c0_37 = arith.constant 0 : index
    %65 = vector.load %arg7[%c1_35, %c0_36, %c0_37] : memref<3x2x32xf32, #tpu.memory_space<vmem>>, vector<1x2x32xf32>
    %66 = vector.shape_cast %65 : vector<1x2x32xf32> to vector<2x32xf32>
    %67 = vector.shape_cast %64 : vector<2x32xf32> to vector<1x2x32xf32>
    tpu.vector_store %arg7[%c1_35, %c0_36, %c0_37], %67 {strides = array<i32>} : memref<3x2x32xf32, #tpu.memory_space<vmem>>, vector<1x2x32xf32>,
    %c1_38 = arith.constant 1 : index
    %c0_39 = arith.constant 0 : index
    %c0_40 = arith.constant 0 : index
    %68 = vector.load %arg8[%c1_38, %c0_39, %c0_40] : memref<3x2x32xf32, #tpu.memory_space<vmem>>, vector<1x2x32xf32>
    %69 = vector.shape_cast %68 : vector<1x2x32xf32> to vector<2x32xf32>
    %70 = vector.shape_cast %62 : vector<2x32xf32> to vector<1x2x32xf32>
    tpu.vector_store %arg8[%c1_38, %c0_39, %c0_40], %70 {strides = array<i32>} : memref<3x2x32xf32, #tpu.memory_space<vmem>>, vector<1x2x32xf32>,
    %c2 = arith.constant 2 : index
    %c0_41 = arith.constant 0 : index
    %c0_42 = arith.constant 0 : index
    %71 = vector.load %arg7[%c2, %c0_41, %c0_42] : memref<3x2x32xf32, #tpu.memory_space<vmem>>, vector<1x2x32xf32>
    %72 = vector.shape_cast %71 : vector<1x2x32xf32> to vector<2x32xf32>
    %c2_43 = arith.constant 2 : index
    %c0_44 = arith.constant 0 : index
    %c0_45 = arith.constant 0 : index
    %73 = vector.load %arg8[%c2_43, %c0_44, %c0_45] : memref<3x2x32xf32, #tpu.memory_space<vmem>>, vector<1x2x32xf32>
    %74 = vector.shape_cast %73 : vector<1x2x32xf32> to vector<2x32xf32>
    %75 = tpu.concatenate %64, %72 in 1 : vector<2x32xf32>, vector<2x32xf32> -> vector<2x64xf32>
    %c2_46 = arith.constant 2 : index
    %c0_47 = arith.constant 0 : index
    %c0_48 = arith.constant 0 : index
    %76 = vector.load %arg4[%c2_46, %c0_47, %c0_48] : memref<3x64x128xf32, #tpu.memory_space<vmem>>, vector<1x64x128xf32>
    %77 = vector.shape_cast %76 : vector<1x64x128xf32> to vector<64x128xf32>
    %cst_49 = arith.constant dense<0.000000e+00> : vector<2x128xf32>
    %78 = tpu.matmul %75, %77, %cst_49 {dimension_numbers = #tpu.dot_dimension_numbers<[1], [0], [0], [1], [0, 0, 1, 1], [], []>} : vector<2x64xf32>, vector<64x128xf32>, vector<2x128xf32> -> vector<2x128xf32>
    %c2_50 = arith.constant 2 : index
    %c0_51 = arith.constant 0 : index
    %c0_52 = arith.constant 0 : index
    %79 = vector.load %arg5[%c2_50, %c0_51, %c0_52] : memref<3x1x128xf32, #tpu.memory_space<vmem>>, vector<1x1x128xf32>
    %80 = vector.shape_cast %79 : vector<1x1x128xf32> to vector<1x128xf32>
    %81 = vector.broadcast %80 : vector<1x128xf32> to vector<2x128xf32>
    %82 = arith.addf %78, %81 : vector<2x128xf32>
    %83 = arith.negf %82 : vector<2x128xf32>
    %84 = math.exp %83 : vector<2x128xf32>
    %cst_53 = arith.constant 1.000000e+00 : f32
    %85 = vector.broadcast %cst_53 : f32 to vector<2x128xf32>
    %86 = arith.addf %85, %84 : vector<2x128xf32>
    %87 = arith.divf %85, %86 : vector<2x128xf32>
    %88 = math.tanh %82 : vector<2x128xf32>
    %89 = vector.extract_strided_slice %87 {offsets = [0, 0], sizes = [2, 32], strides = [1, 1]} : vector<2x128xf32> to vector<2x32xf32>
    %90 = vector.extract_strided_slice %87 {offsets = [0, 32], sizes = [2, 32], strides = [1, 1]} : vector<2x128xf32> to vector<2x32xf32>
    %91 = vector.extract_strided_slice %88 {offsets = [0, 64], sizes = [2, 32], strides = [1, 1]} : vector<2x128xf32> to vector<2x32xf32>
    %92 = vector.extract_strided_slice %87 {offsets = [0, 96], sizes = [2, 32], strides = [1, 1]} : vector<2x128xf32> to vector<2x32xf32>
    %93 = arith.mulf %90, %74 : vector<2x32xf32>
    %94 = arith.mulf %89, %91 : vector<2x32xf32>
    %95 = arith.addf %93, %94 : vector<2x32xf32>
    %96 = math.tanh %95 : vector<2x32xf32>
    %97 = arith.mulf %92, %96 : vector<2x32xf32>
    %c2_54 = arith.constant 2 : index
    %c0_55 = arith.constant 0 : index
    %c0_56 = arith.constant 0 : index
    %98 = vector.load %arg7[%c2_54, %c0_55, %c0_56] : memref<3x2x32xf32, #tpu.memory_space<vmem>>, vector<1x2x32xf32>
    %99 = vector.shape_cast %98 : vector<1x2x32xf32> to vector<2x32xf32>
    %100 = vector.shape_cast %97 : vector<2x32xf32> to vector<1x2x32xf32>
    tpu.vector_store %arg7[%c2_54, %c0_55, %c0_56], %100 {strides = array<i32>} : memref<3x2x32xf32, #tpu.memory_space<vmem>>, vector<1x2x32xf32>,
    %c2_57 = arith.constant 2 : index
    %c0_58 = arith.constant 0 : index
    %c0_59 = arith.constant 0 : index
    %101 = vector.load %arg8[%c2_57, %c0_58, %c0_59] : memref<3x2x32xf32, #tpu.memory_space<vmem>>, vector<1x2x32xf32>
    %102 = vector.shape_cast %101 : vector<1x2x32xf32> to vector<2x32xf32>
    %103 = vector.shape_cast %95 : vector<2x32xf32> to vector<1x2x32xf32>
    tpu.vector_store %arg8[%c2_57, %c0_58, %c0_59], %103 {strides = array<i32>} : memref<3x2x32xf32, #tpu.memory_space<vmem>>, vector<1x2x32xf32>,
    %c0_60 = arith.constant 0 : index
    %c0_61 = arith.constant 0 : index
    %c0_62 = arith.constant 0 : index
    %104 = vector.load %arg6[%c0_60, %c0_61, %c0_62] : memref<1x2x32xf32, #tpu.memory_space<vmem>>, vector<1x2x32xf32>
    %105 = vector.shape_cast %104 : vector<1x2x32xf32> to vector<2x32xf32>
    %106 = vector.shape_cast %97 : vector<2x32xf32> to vector<1x2x32xf32>
    tpu.vector_store %arg6[%c0_60, %c0_61, %c0_62], %106 {strides = array<i32>} : memref<1x2x32xf32, #tpu.memory_space<vmem>>, vector<1x2x32xf32>,
    return
  }
  func.func @transform_0(%arg0: i32) -> (i32, i32, i32) {
    %c0_i32 = arith.constant 0 : i32
    %c0_i32_0 = arith.constant 0 : i32
    %c0_i32_1 = arith.constant 0 : i32
    return %arg0, %c0_i32, %c0_i32_0 : i32, i32, i32
  }
  func.func @transform_1(%arg0: i32) -> (i32, i32, i32) {
    %c0_i32 = arith.constant 0 : i32
    %c0_i32_0 = arith.constant 0 : i32
    %c0_i32_1 = arith.constant 0 : i32
    %c0_i32_2 = arith.constant 0 : i32
    return %c0_i32, %c0_i32_0, %c0_i32_1 : i32, i32, i32
  }
  func.func @transform_2(%arg0: i32) -> (i32, i32, i32) {
    %c0_i32 = arith.constant 0 : i32
    %c0_i32_0 = arith.constant 0 : i32
    %c0_i32_1 = arith.constant 0 : i32
    %c0_i32_2 = arith.constant 0 : i32
    return %c0_i32, %c0_i32_0, %c0_i32_1 : i32, i32, i32
  }
  func.func @transform_3(%arg0: i32) -> (i32, i32, i32) {
    %c0_i32 = arith.constant 0 : i32
    %c0_i32_0 = arith.constant 0 : i32
    %c0_i32_1 = arith.constant 0 : i32
    %c0_i32_2 = arith.constant 0 : i32
    return %c0_i32, %c0_i32_0, %c0_i32_1 : i32, i32, i32
  }
  func.func @transform_4(%arg0: i32) -> (i32, i32, i32) {
    %c0_i32 = arith.constant 0 : i32
    %c0_i32_0 = arith.constant 0 : i32
    %c0_i32_1 = arith.constant 0 : i32
    %c0_i32_2 = arith.constant 0 : i32
    return %c0_i32, %c0_i32_0, %c0_i32_1 : i32, i32, i32
  }
  func.func @transform_5(%arg0: i32) -> (i32, i32, i32) {
    %c0_i32 = arith.constant 0 : i32
    %c0_i32_0 = arith.constant 0 : i32
    %c0_i32_1 = arith.constant 0 : i32
    return %arg0, %c0_i32, %c0_i32_0 : i32, i32, i32
  }
  func.func @transform_6(%arg0: i32) -> (i32, i32, i32) {
    %c0_i32 = arith.constant 0 : i32
    %c0_i32_0 = arith.constant 0 : i32
    %c0_i32_1 = arith.constant 0 : i32
    %c0_i32_2 = arith.constant 0 : i32
    return %c0_i32, %c0_i32_0, %c0_i32_1 : i32, i32, i32
  }
  func.func @transform_7(%arg0: i32) -> (i32, i32, i32) {
    %c0_i32 = arith.constant 0 : i32
    %c0_i32_0 = arith.constant 0 : i32
    %c0_i32_1 = arith.constant 0 : i32
    %c0_i32_2 = arith.constant 0 : i32
    return %c0_i32, %c0_i32_0, %c0_i32_1 : i32, i32, i32
  }
}

</mosaic_0001>

<bundles_post_ra>
// kernel: decoder_forward.1
= control target key start
LH: loop header
LB: loop body
LE: loop exit
PB: predicated region body
PF: predicated region fallthrough
CT: control target
= control target key end

     0   :  { %13 = vsyncpa [#allocation3], 0  ;;  %s987_s0 = inlined_call_operand.vmem [shape: f32[1,2,32], index: 0, kind: input, shape index: {}]   ;;  %s988_s1 = inlined_call_operand.vmem [shape: f32[3,2,32], index: 1, kind: input, shape index: {}]   ;;  %s989_s2 = inlined_call_operand.vmem [shape: f32[3,2,32], index: 2, kind: input, shape index: {}]   ;;  %s990_s3 = inlined_call_operand.hbm [shape: f32[3,64,128], index: 3, kind: input, shape index: {}]   ;;  %s991_s4 = inlined_call_operand.vmem [shape: f32[3,1,128], index: 4, kind: input, shape index: {}]   ;;  %s992_s5 = inlined_call_operand.hbm [shape: f32[1,2,32], index: 5, kind: output, shape index: {0}]   ;;  %s993_s6 = inlined_call_operand.hbm [shape: f32[3,2,32], index: 6, kind: output, shape index: {1}]   ;;  %s994_s7 = inlined_call_operand.hbm [shape: f32[3,2,32], index: 7, kind: output, shape index: {2}]  }
   0x1   :  { %14 = vsyncpa [#allocation4], 0 }
   0x2   :  { %15 = vsyncpa [#allocation7], 0  ;;  %s776_s24 = smov [#allocation2]   ;;  %s682_s28 = scalar_lea.hbm %s990_s3, 3072 }
   0x3   :  { %s27_s25 = sshll.u32 %s776_s24, 4  ;;  %p683_p0 = scmp.ne.s32.totalorder %s990_s3, %s682_s28  ;;  %s28_s25 = int_to_ptr.vmem [resolvable:$true] %s27_s25 }
   0x4   :  { %p686_p1 = scmp.lt.u32.totalorder %s682_s28, %s990_s3 }
   0x6   :  { %p688_p2 = pnand %p686_p1, %p683_p0 }
   0x8   :  { %691 = shalt.err (!%p688_p2)
}
   0x9   :  { %s692_s10 = scalar_lea.vmem %s28_s25, 3072  ;;  %p697_p4 = scmp.lt.s32.totalorder %s28_s25, %s28_s25 }
   0xa   :  { %p693_p3 = scmp.ne.s32.totalorder %s28_s25, %s692_s10  ;;  %p698_p5 = scmp.lt.s32.totalorder %s692_s10, %s692_s10 }
   0xc   :  { %p699_p6 = por %p698_p5, %p697_p4 }
   0xe   :  { %p700_p7 = pnand %p699_p6, %p693_p3 }
  0x10   :  { %703 = shalt.err (!%p700_p7)
}
  0x11   :  { %s777_s11 = smov 128   ;;  %s778_s12 = smov 8  }
  0x12   :  { %33 = dma.hbm_to_vmem [thread:$0]  %s990_s3, 3072, %s28_s25, [#allocation3], %s777_s11, %s777_s11, %s778_s12  }
  0x13   :  { %770 = dma.done.wait [#allocation3], 3072  }
  0x14   :  { %771 = vsyncadd [#allocation3], 4294964224  ;;  %v779_v0 = vmov 0.0|0.0   ;;  %vm780_vm0 = vmmov 0   ;;  %v781_v1 = vmov 0.0   ;;  %vm46_vm1 = vcmask 254976  }
  0x15   :  { %609 = vmatprep.subr.bf16.mxu0 %v779_v0  ;;  %621 = vmatprep.subr.bf16.mxu1 %v779_v0  ;;  %v43_v2 = vld [vmem:[%s988_s1] sm:$0x3]  ;;  %v66_v4 = vld [vmem:[#allocation2 + $0x8] sm:$0xff]  ;;  %v67_v6 = vld [vmem:[#allocation2 + $0x10] sm:$0xff]  ;;  %s782_s18 = smov 32   ;;  %vm63_vm2 = vcmask 261120  }
  0x16   :  { %568 = vmatprep.mubr.msk.f32.mxu0 %vm780_vm0, %v781_v1  ;;  %587 = vmatprep.mubr.msk.f32.mxu1 %vm780_vm0, %v781_v1  ;;  %v65_v3 = vld [vmem:[#allocation2] sm:$0xff]  ;;  %47 = vst.msk [vmem:[#allocation6] sm:$0x3] %vm46_vm1, %v43_v2  ;;  %v68_v7 = vld [vmem:[#allocation2 + $0x18] sm:$0xff]  ;;  %v70_v11 = vld [vmem:[#allocation2 + $0x28] sm:$0xff]  ;;  %vm80_vm3 = vcmask 523264  }
  0x17   :  { %v610_v5 = vpack.c.bf16 %v66_v4, %v65_v3  ;;  %v613_v8 = vpack.c.bf16 %v68_v7, %v67_v6  ;;  %v50_v9 = vld [vmem:[%s989_s2] sm:$0x3]  ;;  %v71_v14 = vld [vmem:[#allocation2 + $0x30] sm:$0xff]  ;;  %v72_v15 = vld [vmem:[#allocation2 + $0x38] sm:$0xff]  ;;  %s783_s23 = smov 64   ;;  %s786_s12 = smov [#allocation5]  }
  0x18   :  { %v69_v10 = vld [vmem:[#allocation2 + $0x20] sm:$0xff]  ;;  %53 = vst.msk [vmem:[#allocation8] sm:$0x3] %vm46_vm1, %v50_v9  ;;  %v619_v16 = vpack.c.bf16 %v72_v15, %v71_v14  ;;  %v204_v38 = vld [vmem:[#allocation2 + $0x48] sm:$0xff]  ;;  %v205_v39 = vld [vmem:[#allocation2 + $0x50] sm:$0xff]  ;;  %s474_s13 = sshll.u32 %s786_s12, 4  ;;  %s928_s13 = int_to_ptr.vmem [resolvable:$true] %s474_s13 }
  0x19   :  { %611 = vmatpush3.bf16.msra.mxu0 %v610_v5  ;;  %v616_v12 = vpack.c.bf16 %v70_v11, %v69_v10  ;;  %v56_v18 = vld [vmem:[%s987_s0] sm:$0x3]  ;;  %v44_v32 = vld [vmem:[%s988_s1 + $0x2] sm:$0x3]  ;;  %v206_v41 = vld [vmem:[#allocation2 + $0x58] sm:$0xff]  ;;  %s787_s14 = smov [#allocation8]  }
  0x1a   :  { %612 = vmatprep.subr.bf16.mxu0 %v779_v0  ;;  %v514_v21 = vld [vmem:[%s991_s4] ss:$0 sm:$0xff]  ;;  %48 = vst.msk [vmem:[#allocation6 + $0x2] sm:$0x3] %vm46_vm1, %v44_v32  ;;  %v625_v42 = vpack.c.bf16 %v206_v41, %v205_v39  ;;  %v208_v44 = vld [vmem:[#allocation2 + $0x68] sm:$0xff]  ;;  %v209_v46 = vld [vmem:[#allocation2 + $0x70] sm:$0xff] }
  0x1b   :  { %v203_v37 = vld [vmem:[#allocation2 + $0x40] sm:$0xff]  ;;  %v210_v47 = vld [vmem:[#allocation2 + $0x78] sm:$0xff]  ;;  %s495_s15 = sshll.u32 %s787_s14, 4  ;;  %s932_s15 = int_to_ptr.vmem [resolvable:$true] %s495_s15 }
  0x1c   :  { %v622_v40 = vpack.c.bf16 %v204_v38, %v203_v37  ;;  %v207_v43 = vld [vmem:[#allocation2 + $0x60] sm:$0xff]  ;;  %v631_v49 = vpack.c.bf16 %v210_v47, %v209_v46  ;;  %v343_v15 = vld [vmem:[#allocation2 + $0x98] sm:$0xff] }
  0x1d   :  { %614 = vmatpush3.bf16.msra.mxu0 %v613_v8  ;;  %v57_v13 = vld [vmem:[#allocation6] sm:$0x3]  ;;  %v628_v45 = vpack.c.bf16 %v208_v44, %v207_v43  ;;  %v518_v58 = vld [vmem:[%s991_s4 + $0x1] ss:$0 sm:$0xff]  ;;  %v45_v6 = vld [vmem:[%s988_s1 + $0x4] sm:$0x3] }
  0x1e   :  { %615 = vmatprep.subr.bf16.mxu0 %v779_v0  ;;  %60 = vrot.lane.b32.xlu0 %v57_v13, %s782_s18  ;;  %v51_v51 = vld [vmem:[%s989_s2 + $0x2] sm:$0x3]  ;;  %49 = vst.msk [vmem:[#allocation6 + $0x4] sm:$0x3] %vm46_vm1, %v45_v6  ;;  %v342_v13 = vld [vmem:[#allocation2 + $0x90] sm:$0xff] }
  0x1f   :  { %v58_v17 = vld [vmem:[#allocation8] sm:$0x3]  ;;  %623 = vmatpush3.bf16.msra.mxu1 %v622_v40  ;;  %54 = vst.msk [vmem:[#allocation8 + $0x2] sm:$0x3] %vm46_vm1, %v51_v51  ;;  %v340_v11 = vld [vmem:[#allocation2 + $0x80] sm:$0xff] }
  0x20   :  { %162 = vrot.lane.b32.xlu1 %v58_v17, %s782_s18  ;;  %624 = vmatprep.subr.bf16.mxu1 %v779_v0  ;;  %v344_v17 = vld [vmem:[#allocation2 + $0xa0] sm:$0xff] }
  0x21   :  { %617 = vmatpush3.bf16.msra.mxu0 %v616_v12  ;;  %v194_v50 = vld [vmem:[#allocation6 + $0x2] sm:$0x3]  ;;  %v341_v12 = vld [vmem:[#allocation2 + $0x88] sm:$0xff] }
  0x22   :  { %618 = vmatprep.subr.bf16.mxu0 %v779_v0  ;;  %v634_v14 = vpack.c.bf16 %v341_v12, %v340_v11 }
  0x23   :  { %626 = vmatpush3.bf16.msra.mxu1 %v625_v42 }
  0x24   :  { %627 = vmatprep.subr.bf16.mxu1 %v779_v0 }
  0x25   :  { %620 = vmatpush3.bf16.msra.mxu0 %v619_v16  ;;  %v637_v16 = vpack.c.bf16 %v343_v15, %v342_v13 }
  0x26   :  { %633 = vmatprep.subr.bf16.mxu0 %v779_v0  ;;  %v196_v52 = vld [vmem:[#allocation8 + $0x2] sm:$0x3] }
  0x27   :  { %629 = vmatpush3.bf16.msra.mxu1 %v628_v45 }
  0x28   :  { %630 = vmatprep.subr.bf16.mxu1 %v779_v0 }
  0x2b   :  { %632 = vmatpush3.bf16.msra.mxu1 %v631_v49 }
  0x90   :  { %v61_v19 = vpop.permute.xlu0 %60 }
  0x91   :  { %v64_v20 = vsel %vm63_vm2, %v56_v18, %v61_v19  ;;  %v345_v18 = vld [vmem:[#allocation2 + $0xa8] sm:$0xff] }
  0x92   :  { %569 = vmatmul.mubr.msk.f32.vlgmr.msra.gmra.mrb[0].mxu0 %vm80_vm3, %v64_v20  ;;  %v163_v33 = vpop.permute.xlu1 %162  ;;  %v640_v19 = vpack.c.bf16 %v345_v18, %v344_v17  ;;  %v346_v20 = vld [vmem:[#allocation2 + $0xb0] sm:$0xff] }
  0x93   :  { %606 = vmatprep.mubr.msk.f32.mxu0 %vm780_vm0, %v781_v1  ;;  %635 = vmatpush3.bf16.msra.mxu0 %v634_v14 }
  0x94   :  { %636 = vmatprep.subr.bf16.mxu0 %v779_v0 }
  0x97   :  { %638 = vmatpush3.bf16.msra.mxu0 %v637_v16 }
  0x98   :  { %639 = vmatprep.subr.bf16.mxu0 %v779_v0 }
  0x9b   :  { %641 = vmatpush3.bf16.msra.mxu0 %v640_v19 }
  0x9c   :  { %642 = vmatprep.subr.bf16.mxu0 %v779_v0 }
 0x165   :  { %v150_v22 = vpop.f32.mrb[0].mxu0 }
 0x166   :  { %v151_v23 = vadd.f32 %v514_v21, %v150_v22  ;;  %v570_v24 = vpop.f32.mrb[1].mxu0  ;;  %v347_v21 = vld [vmem:[#allocation2 + $0xb8] sm:$0xff] }
 0x167   :  { %v331_v24 = vld [vmem:[#allocation6 + $0x4] sm:$0x3] }
 0x168   :  { %658 = vtanh.f32 %v151_v23  ;;  %v516_v26 = vmul.f32 -1.442695, %v151_v23  ;;  %v643_v23 = vpack.c.bf16 %v347_v21, %v346_v20 }
 0x16a   :  { %660 = vpow2.f32 %v516_v26  ;;  %644 = vmatpush3.bf16.msra.mxu0 %v643_v23 }
 0x172   :  { %v659_v25 = vpop.eup %658 }
 0x173   :  { %167 = vrot.lane.b32.xlu0 %v659_v25, %s783_s23  ;;  %v52_v25 = vld [vmem:[%s989_s2 + $0x4] sm:$0x3]  ;;  %s784_s2 = smov 96  }
 0x174   :  { %v661_v27 = vpop.eup %660  ;;  %55 = vst.msk [vmem:[#allocation8 + $0x4] sm:$0x3] %vm46_vm1, %v52_v25 }
 0x175   :  { %v157_v28 = vadd.f32 1.0, %v661_v27 }
 0x177   :  { %662 = vrcp.f32 %v157_v28 }
 0x17b   :  { %v333_v26 = vld [vmem:[#allocation8 + $0x4] sm:$0x3] }
 0x181   :  { %v663_v29 = vpop.eup %662 }
 0x182   :  { %v165_v34 = vmul.f32 %v663_v29, %v163_v33 }
 0x1e5   :  { %v168_v30 = vpop.permute.xlu0 %167 }
 0x1e6   :  { %v170_v31 = vmul.f32 %v663_v29, %v168_v30 }
 0x1e8   :  { %172 = vrot.lane.b32.xlu1 %v170_v31, %s782_s18  ;;  %v522_v31 = vld [vmem:[%s991_s4 + $0x2] ss:$0 sm:$0xff]  ;;  %s785_s4 = smov [#allocation6]  }
 0x1e9   :  { %s483_s11 = sshll.u32 %s785_s4, 4  ;;  %s484_s11 = int_to_ptr.vmem [resolvable:$true] %s483_s11 }
 0x1ea   :  { %s704_s16 = scalar_lea.vmem %s484_s11, 96  ;;  %p709_p9 = scmp.lt.s32.totalorder %s484_s11, %s484_s11 }
 0x1eb   :  { %p705_p8 = scmp.ne.s32.totalorder %s484_s11, %s704_s16  ;;  %p710_p10 = scmp.lt.s32.totalorder %s704_s16, %s704_s16 }
 0x1ed   :  { %p711_p11 = por %p710_p10, %p709_p9 }
 0x1ef   :  { %p712_p12 = pnand %p711_p11, %p705_p8 }
 0x25a   :  { %v173_v35 = vpop.permute.xlu1 %172 }
 0x25b   :  { %v874_v36 = vadd.f32 %v173_v35, %v165_v34 }
 0x25d   :  { %664 = vtanh.f32 %v874_v36 }
 0x267   :  { %v665_v48 = vpop.eup %664 }
 0x268   :  { %178 = vrot.lane.b32.xlu0 %v665_v48, %s783_s23 }
 0x26c   :  { %198 = vrot.lane.b32.xlu0 %v194_v50, %s782_s18 }
 0x270   :  { %300 = vrot.lane.b32.xlu0 %v196_v52, %s782_s18 }
 0x2da   :  { %v179_v53 = vpop.permute.xlu0 %178 }
 0x2db   :  { %v181_v54 = vmul.f32 %v663_v29, %v179_v53 }
 0x2dd   :  { %183 = vrot.lane.b32.xlu1 %v181_v54, %s782_s18 }
 0x2de   :  { %v199_v55 = vpop.permute.xlu0 %198 }
 0x2e2   :  { %v301_v7 = vpop.permute.xlu0 %300 }
 0x34f   :  { %v184_v56 = vpop.permute.xlu1 %183 }
 0x350   :  { %187 = vst.msk [vmem:[#allocation6] sm:$0x3] %vm46_vm1, %v184_v56  ;;  %v201_v57 = vsel %vm63_vm2, %v184_v56, %v199_v55 }
 0x351   :  { %588 = vmatmul.mubr.msk.f32.vlgmr.msra.gmra.mrb[0].mxu1 %vm80_vm3, %v201_v57 }
 0x424   :  { %v288_v59 = vpop.f32.mrb[0].mxu1 }
 0x425   :  { %v289_v60 = vadd.f32 %v518_v58, %v288_v59  ;;  %v589_v61 = vpop.f32.mrb[1].mxu1 }
 0x427   :  { %666 = vtanh.f32 %v289_v60  ;;  %v520_v63 = vmul.f32 -1.442695, %v289_v60 }
 0x429   :  { %668 = vpow2.f32 %v520_v63 }
 0x431   :  { %v667_v62 = vpop.eup %666 }
 0x432   :  { %305 = vrot.lane.b32.xlu1 %v667_v62, %s783_s23 }
 0x433   :  { %v669_v1 = vpop.eup %668 }
 0x434   :  { %v295_v2 = vadd.f32 1.0, %v669_v1 }
 0x436   :  { %670 = vrcp.f32 %v295_v2 }
 0x440   :  { %v671_v3 = vpop.eup %670 }
 0x441   :  { %v303_v8 = vmul.f32 %v671_v3, %v301_v7 }
 0x4a4   :  { %v306_v4 = vpop.permute.xlu1 %305 }
 0x4a5   :  { %v308_v5 = vmul.f32 %v671_v3, %v306_v4 }
 0x4a7   :  { %310 = vrot.lane.b32.xlu1 %v308_v5, %s782_s18 }
 0x519   :  { %v311_v9 = vpop.permute.xlu1 %310 }
 0x51a   :  { %v900_v10 = vadd.f32 %v311_v9, %v303_v8 }
 0x51c   :  { %672 = vtanh.f32 %v900_v10 }
 0x526   :  { %v673_v22 = vpop.eup %672 }
 0x527   :  { %316 = vrot.lane.b32.xlu0 %v673_v22, %s783_s23 }
 0x52b   :  { %335 = vrot.lane.b32.xlu0 %v331_v24, %s782_s18 }
 0x52f   :  { %437 = vrot.lane.b32.xlu0 %v333_v26, %s782_s18 }
 0x599   :  { %v317_v27 = vpop.permute.xlu0 %316 }
 0x59a   :  { %v319_v28 = vmul.f32 %v671_v3, %v317_v27 }
 0x59c   :  { %321 = vrot.lane.b32.xlu1 %v319_v28, %s782_s18 }
 0x59d   :  { %v336_v29 = vpop.permute.xlu0 %335 }
 0x5a1   :  { %v438_v43 = vpop.permute.xlu0 %437 }
 0x60e   :  { %v322_v30 = vpop.permute.xlu1 %321 }
 0x60f   :  { %324 = vst.msk [vmem:[#allocation6 + $0x2] sm:$0x3] %vm46_vm1, %v322_v30  ;;  %v338_v0 = vsel %vm63_vm2, %v322_v30, %v336_v29 }
 0x610   :  { %607 = vmatmul.mubr.msk.f32.vlgmr.msra.gmra.mrb[2].mxu0 %vm80_vm3, %v338_v0 }
 0x6e3   :  { %v425_v32 = vpop.f32.mrb[2].mxu0 }
 0x6e4   :  { %v426_v33 = vadd.f32 %v522_v31, %v425_v32  ;;  %v608_v34 = vpop.f32.mrb[3].mxu0 }
 0x6e6   :  { %674 = vtanh.f32 %v426_v33  ;;  %v524_v37 = vmul.f32 -1.442695, %v426_v33 }
 0x6e8   :  { %676 = vpow2.f32 %v524_v37 }
 0x6f0   :  { %v675_v35 = vpop.eup %674 }
 0x6f1   :  { %442 = vrot.lane.b32.xlu1 %v675_v35, %s783_s23 }
 0x6f2   :  { %v677_v38 = vpop.eup %676 }
 0x6f3   :  { %v432_v39 = vadd.f32 1.0, %v677_v38 }
 0x6f5   :  { %678 = vrcp.f32 %v432_v39 }
 0x6ff   :  { %v679_v40 = vpop.eup %678 }
 0x700   :  { %v440_v44 = vmul.f32 %v679_v40, %v438_v43 }
 0x763   :  { %v443_v41 = vpop.permute.xlu1 %442 }
 0x764   :  { %v445_v42 = vmul.f32 %v679_v40, %v443_v41 }
 0x766   :  { %447 = vrot.lane.b32.xlu1 %v445_v42, %s782_s18 }
 0x7d8   :  { %v448_v45 = vpop.permute.xlu1 %447 }
 0x7d9   :  { %v450_v46 = vadd.f32 %v448_v45, %v440_v44 }
 0x7db   :  { %680 = vtanh.f32 %v450_v46 }
 0x7e5   :  { %v681_v47 = vpop.eup %680 }
 0x7e6   :  { %453 = vrot.lane.b32.xlu0 %v681_v47, %s783_s23 }
 0x7ea   :  { %189 = vrot.lane.b32.xlu0 %v874_v36, %s784_s2 }
 0x7ee   :  { %463 = vrot.lane.b32.xlu0 %v450_v46, %s784_s2 }
 0x858   :  { %v454_v48 = vpop.permute.xlu0 %453 }
 0x859   :  { %v456_v49 = vmul.f32 %v679_v40, %v454_v48 }
 0x85b   :  { %458 = vrot.lane.b32.xlu1 %v456_v49, %s782_s18 }
 0x85c   :  { %v190_v50 = vpop.permute.xlu0 %189 }
 0x85d   :  { %192 = vst.msk [vmem:[#allocation8] sm:$0x3] %vm46_vm1, %v190_v50 }
 0x85f   :  { %326 = vrot.lane.b32.xlu1 %v900_v10, %s784_s2 }
 0x860   :  { %v464_v51 = vpop.permute.xlu0 %463 }
 0x861   :  { %466 = vst.msk [vmem:[#allocation8 + $0x4] sm:$0x3] %vm46_vm1, %v464_v51 }
 0x8cd   :  { %v459_v36 = vpop.permute.xlu1 %458 }
 0x8ce   :  { %461 = vst.msk [vmem:[#allocation6 + $0x4] sm:$0x3] %vm46_vm1, %v459_v36  ;;  %467 = vst.msk [vmem:[#allocation5] sm:$0x3] %vm46_vm1, %v459_v36 }
 0x8cf   :  { %715 = shalt.err (!%p712_p12)
}
 0x8d0   :  { %s716_s19 = scalar_lea.hbm %s993_s6, 96 }
 0x8d1   :  { %p717_p13 = scmp.ne.s32.totalorder %s993_s6, %s716_s19  ;;  %p720_p0 = scmp.lt.u32.totalorder %s716_s19, %s993_s6 }
 0x8d3   :  { %p722_p1 = pnand %p720_p0, %p717_p13 }
 0x8d5   :  { %725 = shalt.err (!%p722_p1)
}
 0x8d6   :  { %s788_s0 = smov 2   ;;  %s726_s26 = scalar_lea.vmem %s928_s13, 32 }
 0x8d7   :  { %489 = dma.vmem_to_hbm [thread:$0]  %s484_s11, 96, %s993_s6, [#allocation7], %s782_s18, %s782_s18, %s788_s0  }
 0x8d8   :  { %p727_p2 = scmp.ne.s32.totalorder %s928_s13, %s726_s26  ;;  %p731_p3 = scmp.lt.s32.totalorder %s928_s13, %s928_s13 }
 0x8d9   :  { %p732_p4 = scmp.lt.s32.totalorder %s726_s26, %s726_s26 }
 0x8db   :  { %p733_p5 = por %p732_p4, %p731_p3 }
 0x8dd   :  { %p734_p6 = pnand %p733_p5, %p727_p2 }
 0x8df   :  { %737 = shalt.err (!%p734_p6)
}
 0x8e0   :  { %s738_s29 = scalar_lea.hbm %s992_s5, 32 }
 0x8e1   :  { %p739_p7 = scmp.ne.s32.totalorder %s992_s5, %s738_s29  ;;  %p742_p8 = scmp.lt.u32.totalorder %s738_s29, %s992_s5 }
 0x8e3   :  { %p744_p9 = pnand %p742_p8, %p739_p7 }
 0x8e5   :  { %747 = shalt.err (!%p744_p9)
}
 0x8e6   :  { %477 = dma.vmem_to_hbm [thread:$0]  %s928_s13, 32, %s992_s5, [#allocation4]   ;;  %v327_v52 = vpop.permute.xlu1 %326 }
 0x8e7   :  { %329 = vst.msk [vmem:[#allocation8 + $0x2] sm:$0x3] %vm46_vm1, %v327_v52  ;;  %s748_s2 = scalar_lea.vmem %s932_s15, 96  ;;  %p753_p11 = scmp.lt.s32.totalorder %s932_s15, %s932_s15 }
 0x8e8   :  { %p749_p10 = scmp.ne.s32.totalorder %s932_s15, %s748_s2  ;;  %p754_p12 = scmp.lt.s32.totalorder %s748_s2, %s748_s2 }
 0x8ea   :  { %p755_p13 = por %p754_p12, %p753_p11 }
 0x8ec   :  { %p756_p0 = pnand %p755_p13, %p749_p10 }
 0x8ee   :  { %759 = shalt.err (!%p756_p0)
}
 0x8ef   :  { %s760_s12 = scalar_lea.hbm %s994_s7, 96 }
 0x8f0   :  { %p761_p1 = scmp.ne.s32.totalorder %s994_s7, %s760_s12  ;;  %p764_p2 = scmp.lt.u32.totalorder %s760_s12, %s994_s7 }
 0x8f2   :  { %p766_p3 = pnand %p764_p2, %p761_p1 }
 0x8f4   :  { %769 = shalt.err (!%p766_p3)
}
 0x8f5   :  { %501 = dma.vmem_to_hbm [thread:$0]  %s932_s15, 96, %s994_s7, [#allocation7], %s782_s18, %s782_s18, %s788_s0  }
 0x8f6   :  { %772 = dma.done.wait [#allocation4], 32  }
 0x8f7   :  { %773 = vsyncadd [#allocation4], 4294967264 }
 0x8f8   :  { %774 = dma.done.wait [#allocation7], 192  }
 0x8f9   :  { %775 = vsyncadd [#allocation7], 4294967104 }
 0x8fa   :  { %511 = vsyncpa [#allocation3], 1 }
 0x8fb   :  { %512 = vsyncpa [#allocation4], 1 }
 0x8fc   :  { %513 = vsyncpa [#allocation7], 1 }

</bundles_post_ra>
